<compile_context>
chip_gen: v6e
topology: v6e:2x2x1
jax: 0.10.0
libtpu: 0.0.40
codegen_flags: <defaults>
</compile_context>

<pallas_src>
import jax
import jax.numpy as jnp
from jax.experimental import pallas as pl
from jax.experimental.pallas import tpu as pltpu


def self_attention_kernel(x_ref, w1_ref, b1_ref, w2_ref, out_ref, wts_ref):
    Bt, S, H = x_ref.shape
    D = w1_ref.shape[1]

    x = x_ref[...]                                       # (Bt, S, H)

    # --- projection MLP: Linear(H, 64) -> ReLU -> Linear(64, 1) -----------------------
    # One MXU matmul over all Bt*S rows (the (Bt, S) -> (Bt*S,) collapse is layout-free).
    xf = x.reshape(Bt * S, H)
    h = jnp.dot(xf, w1_ref[...], preferred_element_type=jnp.float32) + b1_ref[...]
    h = jnp.maximum(h, 0.0)                              # (Bt*S, D), ReLU(inplace=True)
    # Second projection as a lane reduction against the W2 row -> lane-dense (Bt, S)
    # energies.  b2 is omitted: it cancels in the softmax below.
    h3 = h.reshape(Bt, S, D)
    e = jnp.sum(h3 * w2_ref[...], axis=-1)               # (Bt, S)

    # --- softmax over the sequence axis (lanes) ----------------------------------------
    m = jnp.max(e, axis=-1, keepdims=True)               # (Bt, 1)
    p = jnp.exp(e - m)                                   # (Bt, S)
    denom = jnp.sum(p, axis=-1, keepdims=True)           # (Bt, 1)
    inv = pl.reciprocal(denom, approx=True)              # EUP slot
    inv = inv * (2.0 - denom * inv)                      # one Newton step -> ~f32 accurate
    w = p * inv                                          # (Bt, S)
    wts_ref[...] = w

    # --- weighted pooling over S on the MXU: (Bt,1,S) x (Bt,S,H) -> (Bt,1,H) ------------
    pooled = jnp.einsum("bqs,bsh->bqh", w[:, None, :], x,
                        preferred_element_type=jnp.float32)
    out_ref[...] = pooled[:, 0, :]                       # (Bt, H)


def _round_up(n, m):
    return (n + m - 1) // m * m


def self_attention(x, w1, b1, w2, b2=None, *, block_b=None):
    """x: (B, S, H) f32.  w1: (H, 64) (Linear(H,64) weight, pre-transposed), b1: (1, 64),
    w2: (1, 64) (the Linear(64,1) weight row).  b2 is accepted for interface fidelity but
    is a uniform shift of the pre-softmax energies, so it has no effect on either output
    and is not sent to the device.  Returns (outputs (B, H), weights (B, S))."""
    del b2
    B, S, H = x.shape
    D = w1.shape[1]

    # Sublane-aligned batch tile (>= 8); pad the batch with zero rows up to a multiple.
    if block_b is None:
        block_b = min(_round_up(B, 8), 64)
    B_pad = _round_up(B, block_b)
    if B_pad != B:
        x = jnp.pad(x, ((0, B_pad - B), (0, 0), (0, 0)))

    out_shapes = (
        jax.ShapeDtypeStruct((B_pad, H), jnp.float32),   # pooled outputs (sublane-dense)
        jax.ShapeDtypeStruct((B_pad, S), jnp.float32),   # attention weights (lane-dense)
    )

    grid_spec = pltpu.PrefetchScalarGridSpec(
        num_scalar_prefetch=0,
        grid=(B_pad // block_b,),
        in_specs=[
            pl.BlockSpec((block_b, S, H), lambda b: (b, 0, 0)),  # batch tile of x
            pl.BlockSpec((H, D), lambda b: (0, 0)),              # W1^T  (H, 64)
            pl.BlockSpec((1, D), lambda b: (0, 0)),              # b1    (1, 64)
            pl.BlockSpec((1, D), lambda b: (0, 0)),              # W2 row (1, 64)
        ],
        out_specs=[
            pl.BlockSpec((block_b, H), lambda b: (b, 0)),
            pl.BlockSpec((block_b, S), lambda b: (b, 0)),
        ],
    )

    outputs, weights = pl.pallas_call(
        self_attention_kernel,
        out_shape=out_shapes,
        grid_spec=grid_spec,
        compiler_params=pltpu.CompilerParams(
            dimension_semantics=("parallel",)),   # sharded over 2 TCs on v7x; no-op on v5e/v6e
    )(x, w1, b1, w2)

    return outputs[:B], weights[:B]


def reference(x, w1, b1, w2, b2):
    h = jnp.maximum(jnp.einsum("bsh,hd->bsd", x, w1) + b1, 0.0)
    e = jnp.einsum("bsd,d->bs", h, w2[0]) + b2
    w = jax.nn.softmax(e, axis=1)
    out = jnp.sum(x * w[..., None], axis=1)
    return out, w


if __name__ == "__main__":
    def run_case(B, S, H, key):
        D = 64
        kx, k1, k2, k3, k4 = jax.random.split(key, 5)
        x = jax.random.normal(kx, (B, S, H), dtype=jnp.float32)
        # Deterministic synthetic parameters (shapes match nn.Linear(H,64), nn.Linear(64,1)),
        # stored pre-transposed / row-form so the kernel computes x @ W^T + b directly.
        w1 = jax.random.normal(k1, (H, D), dtype=jnp.float32) / jnp.sqrt(H)
        b1 = jax.random.normal(k2, (1, D), dtype=jnp.float32) * 0.01
        w2 = jax.random.normal(k3, (1, D), dtype=jnp.float32) / jnp.sqrt(D)
        b2 = jax.random.normal(k4, (), dtype=jnp.float32) * 0.01

        outputs, weights = self_attention(x, w1, b1, w2, b2)
        jax.block_until_ready((outputs, weights))

        ref_out, ref_w = reference(x, w1, b1, w2, b2)
        assert outputs.shape == (B, H) and weights.shape == (B, S)
        assert jnp.allclose(outputs, ref_out, atol=1e-4, rtol=1e-4)
        assert jnp.allclose(weights, ref_w, atol=1e-4, rtol=1e-4)

    key = jax.random.PRNGKey(0)
    k_a, k_b = jax.random.split(key)
    run_case(2, 8, 32, k_a)      # module-typical tiny shapes (B=2, S=8, H=32)
    run_case(5, 16, 128, k_b)    # exercises batch padding + wider hidden
    print("KERNEL_OK")
</pallas_src>

<mosaic_0001>
module attributes {stable_mosaic.version = 11 : i64} {
  func.func @self_attention_kernel(%arg0: i32, %arg1: memref<8x8x32xf32, #tpu.memory_space<vmem>>, %arg2: memref<32x64xf32, #tpu.memory_space<vmem>>, %arg3: memref<1x64xf32, #tpu.memory_space<vmem>>, %arg4: memref<1x64xf32, #tpu.memory_space<vmem>>, %arg5: memref<8x32xf32, #tpu.memory_space<vmem>>, %arg6: memref<8x8xf32, #tpu.memory_space<vmem>>) attributes {dimension_semantics = [#tpu.dimension_semantics<parallel>], iteration_bounds = array<i64: 1>, scalar_prefetch = 0 : i64, scratch_operands = 0 : i64, tpu.core_type = #tpu.core_type<tc>, window_params = [{transform_indices = @transform_0, window_bounds = array<i64: 8, 8, 32>}, {pipeline_mode = #tpu.pipeline_mode<synchronous>, transform_indices = @transform_1, window_bounds = array<i64: 32, 64>}, {pipeline_mode = #tpu.pipeline_mode<synchronous>, transform_indices = @transform_2, window_bounds = array<i64: 1, 64>}, {pipeline_mode = #tpu.pipeline_mode<synchronous>, transform_indices = @transform_3, window_bounds = array<i64: 1, 64>}, {transform_indices = @transform_4, window_bounds = array<i64: 8, 32>}, {transform_indices = @transform_5, window_bounds = array<i64: 8, 8>}]} {
    %c0 = arith.constant 0 : index
    %c0_0 = arith.constant 0 : index
    %c0_1 = arith.constant 0 : index
    %0 = vector.load %arg1[%c0, %c0_0, %c0_1] : memref<8x8x32xf32, #tpu.memory_space<vmem>>, vector<8x8x32xf32>
    %1 = vector.shape_cast %0 : vector<8x8x32xf32> to vector<64x32xf32>
    %c0_2 = arith.constant 0 : index
    %c0_3 = arith.constant 0 : index
    %2 = vector.load %arg2[%c0_2, %c0_3] : memref<32x64xf32, #tpu.memory_space<vmem>>, vector<32x64xf32>
    %cst = arith.constant dense<0.000000e+00> : vector<64x64xf32>
    %3 = tpu.matmul %1, %2, %cst {dimension_numbers = #tpu.dot_dimension_numbers<[1], [0], [0], [1], [0, 0, 1, 1], [], []>} : vector<64x32xf32>, vector<32x64xf32>, vector<64x64xf32> -> vector<64x64xf32>
    %c0_4 = arith.constant 0 : index
    %c0_5 = arith.constant 0 : index
    %4 = vector.load %arg3[%c0_4, %c0_5] : memref<1x64xf32, #tpu.memory_space<vmem>>, vector<1x64xf32>
    %5 = vector.broadcast %4 : vector<1x64xf32> to vector<64x64xf32>
    %6 = arith.addf %3, %5 : vector<64x64xf32>
    %cst_6 = arith.constant 0.000000e+00 : f32
    %7 = vector.broadcast %cst_6 : f32 to vector<64x64xf32>
    %8 = arith.maximumf %6, %7 : vector<64x64xf32>
    %9 = vector.shape_cast %8 : vector<64x64xf32> to vector<8x8x64xf32>
    %c0_7 = arith.constant 0 : index
    %c0_8 = arith.constant 0 : index
    %10 = vector.load %arg4[%c0_7, %c0_8] : memref<1x64xf32, #tpu.memory_space<vmem>>, vector<1x64xf32>
    %11 = vector.shape_cast %10 : vector<1x64xf32> to vector<1x1x64xf32>
    %12 = vector.broadcast %11 : vector<1x1x64xf32> to vector<8x8x64xf32>
    %13 = arith.mulf %9, %12 : vector<8x8x64xf32>
    %cst_9 = arith.constant dense<0.000000e+00> : vector<8x8xf32>
    %14 = vector.multi_reduction <add>, %13, %cst_9 [2] : vector<8x8x64xf32> to vector<8x8xf32>
    %cst_10 = arith.constant dense<0xFF800000> : vector<8xf32>
    %15 = vector.multi_reduction <maximumf>, %14, %cst_10 [1] : vector<8x8xf32> to vector<8xf32>
    %16 = vector.shape_cast %15 : vector<8xf32> to vector<8x1xf32>
    %17 = vector.broadcast %16 : vector<8x1xf32> to vector<8x8xf32>
    %18 = arith.subf %14, %17 : vector<8x8xf32>
    %19 = math.exp %18 : vector<8x8xf32>
    %cst_11 = arith.constant dense<0.000000e+00> : vector<8xf32>
    %20 = vector.multi_reduction <add>, %19, %cst_11 [1] : vector<8x8xf32> to vector<8xf32>
    %21 = vector.shape_cast %20 : vector<8xf32> to vector<8x1xf32>
    %22 = tpu.reciprocal %21 {approx = true} : vector<8x1xf32> -> vector<8x1xf32>
    %23 = arith.mulf %21, %22 : vector<8x1xf32>
    %cst_12 = arith.constant 2.000000e+00 : f32
    %24 = vector.broadcast %cst_12 : f32 to vector<8x1xf32>
    %25 = arith.subf %24, %23 : vector<8x1xf32>
    %26 = arith.mulf %22, %25 : vector<8x1xf32>
    %27 = vector.broadcast %26 : vector<8x1xf32> to vector<8x8xf32>
    %28 = arith.mulf %19, %27 : vector<8x8xf32>
    %c0_13 = arith.constant 0 : index
    %c0_14 = arith.constant 0 : index
    %29 = vector.load %arg6[%c0_13, %c0_14] : memref<8x8xf32, #tpu.memory_space<vmem>>, vector<8x8xf32>
    tpu.vector_store %arg6[%c0_13, %c0_14], %28 {strides = array<i32>} : memref<8x8xf32, #tpu.memory_space<vmem>>, vector<8x8xf32>,
    %30 = vector.shape_cast %28 : vector<8x8xf32> to vector<8x1x8xf32>
    "tpu.trace_start"() <{level = 10 : i32, message = "bqs,bsh->bqh"}> : () -> ()
    %cst_15 = arith.constant dense<0.000000e+00> : vector<8x1x32xf32>
    %31 = tpu.matmul %30, %0, %cst_15 {dimension_numbers = #tpu.dot_dimension_numbers<[2], [1], [1], [2], [0, 0, 0, 1, 1, 2], [0], [0]>} : vector<8x1x8xf32>, vector<8x8x32xf32>, vector<8x1x32xf32> -> vector<8x1x32xf32>
    "tpu.trace_stop"() : () -> ()
    %32 = vector.shape_cast %31 : vector<8x1x32xf32> to vector<8x32xf32>
    %c0_16 = arith.constant 0 : index
    %c0_17 = arith.constant 0 : index
    %33 = vector.load %arg5[%c0_16, %c0_17] : memref<8x32xf32, #tpu.memory_space<vmem>>, vector<8x32xf32>
    tpu.vector_store %arg5[%c0_16, %c0_17], %32 {strides = array<i32>} : memref<8x32xf32, #tpu.memory_space<vmem>>, vector<8x32xf32>,
    return
  }
  func.func @transform_0(%arg0: i32) -> (i32, i32, i32) {
    %c0_i32 = arith.constant 0 : i32
    %c0_i32_0 = arith.constant 0 : i32
    %c0_i32_1 = arith.constant 0 : i32
    return %arg0, %c0_i32, %c0_i32_0 : i32, i32, i32
  }
  func.func @transform_1(%arg0: i32) -> (i32, i32) {
    %c0_i32 = arith.constant 0 : i32
    %c0_i32_0 = arith.constant 0 : i32
    %c0_i32_1 = arith.constant 0 : i32
    return %c0_i32, %c0_i32_0 : i32, i32
  }
  func.func @transform_2(%arg0: i32) -> (i32, i32) {
    %c0_i32 = arith.constant 0 : i32
    %c0_i32_0 = arith.constant 0 : i32
    %c0_i32_1 = arith.constant 0 : i32
    return %c0_i32, %c0_i32_0 : i32, i32
  }
  func.func @transform_3(%arg0: i32) -> (i32, i32) {
    %c0_i32 = arith.constant 0 : i32
    %c0_i32_0 = arith.constant 0 : i32
    %c0_i32_1 = arith.constant 0 : i32
    return %c0_i32, %c0_i32_0 : i32, i32
  }
  func.func @transform_4(%arg0: i32) -> (i32, i32) {
    %c0_i32 = arith.constant 0 : i32
    %c0_i32_0 = arith.constant 0 : i32
    return %arg0, %c0_i32 : i32, i32
  }
  func.func @transform_5(%arg0: i32) -> (i32, i32) {
    %c0_i32 = arith.constant 0 : i32
    %c0_i32_0 = arith.constant 0 : i32
    return %arg0, %c0_i32 : i32, i32
  }
}

</mosaic_0001>

<bundles_post_ra>
// kernel: tpu_custom_call.1
= control target key start
LH: loop header
LB: loop body
LE: loop exit
PB: predicated region body
PF: predicated region fallthrough
CT: control target
= control target key end

     0   :  { %11 = vsyncpa [#allocation3], 0  ;;  %s1672_s0 = inlined_call_operand.hbm [shape: f32[8,8,32], index: 0, kind: input, shape index: {}]   ;;  %s1673_s1 = inlined_call_operand.hbm [shape: f32[32,64], index: 1, kind: input, shape index: {}]   ;;  %s1674_s2 = inlined_call_operand.vmem [shape: f32[1,64], index: 2, kind: input, shape index: {}]   ;;  %s1675_s3 = inlined_call_operand.vmem [shape: f32[1,64], index: 3, kind: input, shape index: {}]   ;;  %s1676_s4 = inlined_call_operand.hbm [shape: f32[8,32], index: 4, kind: output, shape index: {0}]   ;;  %s1677_s5 = inlined_call_operand.hbm [shape: f32[8,8], index: 5, kind: output, shape index: {1}]  }
   0x1   :  { %12 = vsyncpa [#allocation6], 0 }
   0x2   :  { %13 = vsyncpa [#allocation4], 0 }
   0x3   :  { %14 = vsyncpa [#allocation9], 0  ;;  %s1426_s18 = smov [#allocation2]  }
   0x4   :  { %s20_s19 = sshll.u32 %s1426_s18, 4  ;;  %s21_s19 = int_to_ptr.vmem [resolvable:$true] %s20_s19 }
   0x5   :  { %s1346_s20 = scalar_lea.vmem %s21_s19, 1024  ;;  %p1351_p1 = scmp.lt.s32.totalorder %s21_s19, %s21_s19 }
   0x6   :  { %p1347_p0 = scmp.ne.s32.totalorder %s21_s19, %s1346_s20  ;;  %p1352_p2 = scmp.lt.s32.totalorder %s1346_s20, %s1346_s20 }
   0x8   :  { %p1353_p3 = por %p1352_p2, %p1351_p1 }
   0xa   :  { %p1354_p4 = pnand %p1353_p3, %p1347_p0 }
   0xc   :  { %1357 = shalt.err (!%p1354_p4)
}
   0xd   :  { %s1427_s21 = smov 128   ;;  %s1428_s22 = smov 8  }
   0xe   :  { %26 = dma.hbm_to_vmem [thread:$0]  %s1672_s0, 1024, %s21_s19, [#allocation3], %s1427_s21, %s1427_s21, %s1428_s22  }
   0xf   :  { %s1429_s25 = smov [#allocation5]  }
  0x10   :  { %s32_s26 = sshll.u32 %s1429_s25, 4  ;;  %s33_s26 = int_to_ptr.vmem [resolvable:$true] %s32_s26 }
  0x11   :  { %s1366_s27 = scalar_lea.vmem %s33_s26, 512  ;;  %p1371_p6 = scmp.lt.s32.totalorder %s33_s26, %s33_s26 }
  0x12   :  { %p1367_p5 = scmp.ne.s32.totalorder %s33_s26, %s1366_s27  ;;  %p1372_p7 = scmp.lt.s32.totalorder %s1366_s27, %s1366_s27 }
  0x14   :  { %p1373_p8 = por %p1372_p7, %p1371_p6 }
  0x16   :  { %p1374_p9 = pnand %p1373_p8, %p1367_p5 }
  0x18   :  { %1377 = shalt.err (!%p1374_p9)
}
  0x19   :  { %38 = dma.hbm_to_vmem [thread:$0]  %s1673_s1, 512, %s33_s26, [#allocation6], %s1427_s21, %s1427_s21, %s1428_s22  }
  0x1a   :  { %1418 = dma.done.wait [#allocation3], 1024  }
  0x1b   :  { %1419 = vsyncadd [#allocation3], 4294966272 }
  0x1c   :  { %1420 = dma.done.wait [#allocation6], 512  }
  0x1d   :  { %1421 = vsyncadd [#allocation6], 4294966784  ;;  %vm68_vm0 = vcmask 261120   ;;  %v60_v0 = vld [vmem:[#allocation5 + $0x18] sm:$0xff]  ;;  %v59_v1 = vld [vmem:[#allocation5 + $0x10] sm:$0xff]  ;;  %vm221_vm1 = vcmask 523264   ;;  %v254_v54 = vlaneseq }
  0x1e   :  { %1249 = vmatprep.subr.mxu0 %v60_v0  ;;  %v1471_v2 = vld [vmem:[#allocation2] sm:$0xff]  ;;  %v58_v3 = vld [vmem:[#allocation5 + $0x8] sm:$0xff]  ;;  %v1477_v6 = vld [vmem:[#allocation2 + $0x10] sm:$0xff]  ;;  %vm288_vm2 = vcmask 1041409   ;;  %vm290_vm3 = vcmask 1042434   ;;  %vm292_vm4 = vcmask 1043459  }
  0x1f   :  { %1250 = vmatpush3.msra.mxu0 %v60_v0  ;;  %1257 = vmatprep.mubr.msk.f32.mxu0 %vm68_vm0, %v1471_v2  ;;  %v57_v4 = vld [vmem:[#allocation5] sm:$0xff]  ;;  %v1475_v5 = vld [vmem:[#allocation2 + $0x8] sm:$0xff]  ;;  %v1483_v7 = vld [vmem:[#allocation2 + $0x18] sm:$0xff]  ;;  %v255_v55 = vand.u32 127, %v254_v54  ;;  %v1517_v56 = vshrl.u32 %v254_v54, 7  ;;  %vm294_vm5 = vcmask 1044484  }
  0x20   :  { %1251 = vmatprep.subr.mxu0 %v59_v1  ;;  %v1485_v8 = vld [vmem:[#allocation2 + $0x20] sm:$0xff]  ;;  %v1491_v9 = vld [vmem:[#allocation2 + $0x28] sm:$0xff]  ;;  %v1493_v10 = vld [vmem:[#allocation2 + $0x30] sm:$0xff]  ;;  %vm296_vm6 = vcmask 1045509   ;;  %vm298_vm7 = vcmask 1046534   ;;  %vm300_vm8 = vcmask 1047559  }
  0x21   :  { %1252 = vmatpush3.msra.mxu0 %v59_v1  ;;  %v1499_v11 = vld [vmem:[#allocation2 + $0x38] sm:$0xff]  ;;  %v1203_v12 = vld [vmem:[%s1674_s2] ss:$0 sm:$0xff]  ;;  %v1520_v58 = vsub.s32 %v255_v55, %v1517_v56  ;;  %vm303_vm9 = vcmask 64512   ;;  %vm1432_vm10 = vmmov 0   ;;  %s1433_s2 = smov [#allocation8]  }
  0x22   :  { %1253 = vmatprep.subr.mxu0 %v58_v3  ;;  %v1212_v16 = vld [vmem:[%s1675_s3] ss:$0 sm:$0xff]  ;;  %s1189_s3 = sshll.u32 %s1433_s2, 4  ;;  %s1190_s3 = int_to_ptr.vmem [resolvable:$true] %s1189_s3 }
  0x23   :  { %1254 = vmatpush3.msra.mxu0 %v58_v3  ;;  %s1378_s7 = scalar_lea.vmem %s1190_s3, 128  ;;  %p1383_p11 = scmp.lt.s32.totalorder %s1190_s3, %s1190_s3 }
  0x24   :  { %1255 = vmatprep.subr.mxu0 %v57_v4  ;;  %p1379_p10 = scmp.ne.s32.totalorder %s1190_s3, %s1378_s7  ;;  %p1384_p12 = scmp.lt.s32.totalorder %s1378_s7, %s1378_s7 }
  0x25   :  { %1256 = vmatpush3.msra.mxu0 %v57_v4 }
  0x26   :  { %1258 = vmatmul.mubr.msk.f32.vlgmr.msra.gmra.mxu0 %vm68_vm0, %v1475_v5  ;;  %p1385_p13 = por %p1384_p12, %p1383_p11 }
  0x27   :  { %1260 = vmatprep.mubr.msk.f32.mxu0 %vm68_vm0, %v1477_v6 }
  0x28   :  { %p1386_p0 = pnand %p1385_p13, %p1379_p10 }
  0x2a   :  { %1261 = vmatmul.mubr.msk.f32.gmra.mxu0 %vm68_vm0, %v1483_v7 }
  0x2b   :  { %1263 = vmatprep.mubr.msk.f32.mxu0 %vm68_vm0, %v1485_v8 }
  0x2e   :  { %1264 = vmatmul.mubr.msk.f32.gmra.mxu0 %vm68_vm0, %v1491_v9 }
  0x2f   :  { %1266 = vmatprep.mubr.msk.f32.mxu0 %vm68_vm0, %v1493_v10 }
  0x32   :  { %1267 = vmatmul.mubr.msk.f32.gmra.mxu0 %vm68_vm0, %v1499_v11 }
  0xe6   :  { %v1259_v13 = vpop.f32.mrf.mxu0 }
  0xe7   :  { %v165_v14 = vadd.f32 %v1259_v13, %v1203_v12 }
  0xe8   :  { %v159_v15 = vpop.f32.mrf.mxu0 }
  0xe9   :  { %v199_v17 = vmax.f32 %v165_v14, 0.0  ;;  %v160_v18 = vadd.f32 %v1203_v12, %v159_v15 }
  0xea   :  { %v1262_v19 = vpop.f32.mrf.mxu0 }
  0xeb   :  { %v198_v20 = vmax.f32 %v160_v18, 0.0  ;;  %v175_v21 = vadd.f32 %v1262_v19, %v1203_v12  ;;  %v214_v22 = vmul.f32 %v1212_v16, %v199_v17 }
  0xec   :  { %v169_v23 = vpop.f32.mrf.mxu0 }
  0xed   :  { %v201_v24 = vmax.f32 %v175_v21, 0.0  ;;  %v170_v25 = vadd.f32 %v1203_v12, %v169_v23  ;;  %v225_v26 = vsel %vm221_vm1, %v214_v22, 0.0  ;;  %v213_v27 = vmul.f32 %v1212_v16, %v198_v20 }
  0xee   :  { %226 = vadd.xlane.f32.xlu0 %v225_v26  ;;  %v1265_v28 = vpop.f32.mrf.mxu0  ;;  %v1430_v26 = vmov 0  }
  0xef   :  { %v200_v29 = vmax.f32 %v170_v25, 0.0  ;;  %v185_v30 = vadd.f32 %v1265_v28, %v1203_v12  ;;  %v216_v31 = vmul.f32 %v1212_v16, %v201_v24  ;;  %v222_v33 = vsel %vm221_vm1, %v213_v27, 0.0  ;;  %1319 = vset.pattern.permute.xlu0 %v1430_v26  ;;  %1318 = vset.pattern.permute.xlu1 %v1430_v26 }
  0xf0   :  { %v179_v32 = vpop.f32.mrf.mxu0  ;;  %v310_v27 = vsub.s32 0, %v1517_v56  ;;  %v314_v28 = vsub.s32 1, %v1517_v56 }
  0xf1   :  { %v203_v34 = vmax.f32 %v185_v30, 0.0  ;;  %v180_v35 = vadd.f32 %v1203_v12, %v179_v32  ;;  %v231_v36 = vsel %vm221_vm1, %v216_v31, 0.0  ;;  %v215_v37 = vmul.f32 %v1212_v16, %v200_v29 }
  0xf2   :  { %232 = vadd.xlane.f32.xlu1 %v231_v36  ;;  %v1268_v38 = vpop.f32.mrf.mxu0  ;;  %223 = vadd.xlane.f32.xlu0 %v222_v33  ;;  %v318_v29 = vsub.s32 2, %v1517_v56  ;;  %v322_v30 = vsub.s32 3, %v1517_v56 }
  0xf3   :  { %v202_v39 = vmax.f32 %v180_v35, 0.0  ;;  %v195_v40 = vadd.f32 %v1268_v38, %v1203_v12  ;;  %v228_v42 = vsel %vm221_vm1, %v215_v37, 0.0  ;;  %v218_v46 = vmul.f32 %v1212_v16, %v203_v34 }
  0xf4   :  { %v189_v41 = vpop.f32.mrf.mxu0  ;;  %v326_v35 = vsub.s32 4, %v1517_v56 }
  0xf5   :  { %v205_v43 = vmax.f32 %v195_v40, 0.0  ;;  %v190_v44 = vadd.f32 %v1203_v12, %v189_v41  ;;  %v217_v45 = vmul.f32 %v1212_v16, %v202_v39  ;;  %v237_v49 = vsel %vm221_vm1, %v218_v46, 0.0 }
  0xf6   :  { %229 = vadd.xlane.f32.xlu1 %v228_v42  ;;  %v330_v42 = vsub.s32 5, %v1517_v56  ;;  %v334_v46 = vsub.s32 6, %v1517_v56 }
  0xf7   :  { %v204_v47 = vmax.f32 %v190_v44, 0.0  ;;  %v234_v48 = vsel %vm221_vm1, %v217_v45, 0.0  ;;  %v220_v51 = vmul.f32 %v1212_v16, %v205_v43 }
  0xf8   :  { %235 = vadd.xlane.f32.xlu0 %v234_v48 }
  0xf9   :  { %v219_v50 = vmul.f32 %v1212_v16, %v204_v47  ;;  %v243_v53 = vsel %vm221_vm1, %v220_v51, 0.0 }
  0xfa   :  { %238 = vadd.xlane.f32.xlu1 %v237_v49 }
  0xfb   :  { %v240_v52 = vsel %vm221_vm1, %v219_v50, 0.0  ;;  %v338_v50 = vsub.s32 7, %v1517_v56 }
  0xfc   :  { %241 = vadd.xlane.f32.xlu0 %v240_v52 }
  0xfe   :  { %244 = vadd.xlane.f32.xlu1 %v243_v53 }
 0x177   :  { %v227_v57 = vpop.xlane.xlu0 %226 }
 0x178   :  { %v263_v62 = vrot.slane %v227_v57, %v1520_v58 }
 0x17b   :  { %v233_v59 = vpop.xlane.xlu1 %232  ;;  %v224_v60 = vpop.xlane.xlu0 %223 }
 0x17c   :  { %v259_v61 = vrot.slane %v224_v60, %v1520_v58  ;;  %v271_v1 = vrot.slane %v233_v59, %v1520_v58 }
 0x17e   :  { %v289_v3 = vsel %vm288_vm2, %v263_v62, %v259_v61 }
 0x17f   :  { %v230_v63 = vpop.xlane.xlu1 %229 }
 0x180   :  { %v267_v0 = vrot.slane %v230_v63, %v1520_v58 }
 0x181   :  { %v236_v4 = vpop.xlane.xlu0 %235 }
 0x182   :  { %v291_v12 = vsel %vm290_vm3, %v267_v0, %v289_v3  ;;  %v275_v13 = vrot.slane %v236_v4, %v1520_v58 }
 0x183   :  { %v293_v14 = vsel %vm292_vm4, %v271_v1, %v291_v12  ;;  %v239_v15 = vpop.xlane.xlu1 %238 }
 0x184   :  { %v295_v16 = vsel %vm294_vm5, %v275_v13, %v293_v14  ;;  %v279_v17 = vrot.slane %v239_v15, %v1520_v58 }
 0x185   :  { %v242_v18 = vpop.xlane.xlu0 %241 }
 0x186   :  { %v283_v19 = vrot.slane %v242_v18, %v1520_v58  ;;  %v297_v20 = vsel %vm296_vm6, %v279_v17, %v295_v16 }
 0x187   :  { %v245_v21 = vpop.xlane.xlu1 %244 }
 0x188   :  { %v287_v22 = vrot.slane %v245_v21, %v1520_v58  ;;  %v299_v23 = vsel %vm298_vm7, %v283_v19, %v297_v20 }
 0x18a   :  { %v301_v24 = vsel %vm300_vm8, %v287_v22, %v299_v23 }
 0x18b   :  { %v304_v25 = vsel %vm303_vm9, %v301_v24, -inf }
 0x18c   :  { %305 = vmax.xlane.f32.xlu0 %v304_v25 }
 0x215   :  { %v306_v31 = vpop.xlane.xlu0 %305 }
 0x216   :  { %v311_v32 = vrot.slane %v306_v31, %v310_v27  ;;  %v315_v33 = vrot.slane %v306_v31, %v314_v28  ;;  %v319_v34 = vrot.slane %v306_v31, %v318_v29  ;;  %v323_v36 = vrot.slane %v306_v31, %v322_v30 }
 0x217   :  { %v327_v43 = vrot.slane %v306_v31, %v326_v35  ;;  %v331_v47 = vrot.slane %v306_v31, %v330_v42  ;;  %v335_v51 = vrot.slane %v306_v31, %v334_v46  ;;  %v339_v54 = vrot.slane %v306_v31, %v338_v50 }
 0x218   :  { %v348_v37 = vsub.f32 %v224_v60, %v311_v32  ;;  %v349_v38 = vsub.f32 %v227_v57, %v315_v33  ;;  %v350_v39 = vsub.f32 %v230_v63, %v319_v34  ;;  %v351_v44 = vsub.f32 %v233_v59, %v323_v36 }
 0x219   :  { %v352_v48 = vsub.f32 %v236_v4, %v327_v43  ;;  %v353_v52 = vsub.f32 %v239_v15, %v331_v47  ;;  %v354_v55 = vsub.f32 %v242_v18, %v335_v51  ;;  %v355_v61 = vsub.f32 %v245_v21, %v339_v54 }
 0x21a   :  { %v356_v40 = vmul.f32 1.442695, %v348_v37  ;;  %v358_v41 = vmul.f32 1.442695, %v349_v38  ;;  %v360_v45 = vmul.f32 1.442695, %v350_v39 }
 0x21b   :  { %v362_v49 = vmul.f32 1.442695, %v351_v44  ;;  %v364_v53 = vmul.f32 1.442695, %v352_v48  ;;  %v366_v57 = vmul.f32 1.442695, %v353_v52 }
 0x21c   :  { %1320 = vpow2.f32 %v356_v40  ;;  %v368_v62 = vmul.f32 1.442695, %v354_v55  ;;  %v370_v0 = vmul.f32 1.442695, %v355_v61  ;;  %v1431_v54 = vmov 0.0  }
 0x21d   :  { %1322 = vpow2.f32 %v358_v41  ;;  %1269 = vmatprep.subr.mxu1 %v1431_v54  ;;  %1271 = vmatprep.mubr.msk.f32.mxu1 %vm1432_vm10, %v1431_v54 }
 0x21e   :  { %1324 = vpow2.f32 %v360_v45  ;;  %1270 = vmatpush3.msra.mxu1 %v1471_v2  ;;  %1299 = vmatprep.subr.mxu0 %v1431_v54 }
 0x21f   :  { %1326 = vpow2.f32 %v362_v49  ;;  %1274 = vmatprep.subr.mxu1 %v1431_v54  ;;  %1300 = vmatpush3.msra.mxu0 %v1493_v10 }
 0x220   :  { %1328 = vpow2.f32 %v364_v53  ;;  %1301 = vmatprep.mubr.msk.f32.mxu0 %vm1432_vm10, %v1431_v54 }
 0x221   :  { %1330 = vpow2.f32 %v366_v57 }
 0x222   :  { %1332 = vpow2.f32 %v368_v62 }
 0x223   :  { %1334 = vpow2.f32 %v370_v0 }
 0x229   :  { %v1321_v59 = vpop.eup %1320 }
 0x22a   :  { %v1323_v60 = vpop.eup %1322  ;;  %381 = vperm.xlu1 %1318, %v1321_v59  }
 0x22b   :  { %384 = vperm.xlu0 %1319, %v1323_v60   ;;  %v1325_v63 = vpop.eup %1324 }
 0x22c   :  { %v1327_v1 = vpop.eup %1326 }
 0x22d   :  { %v1329_v3 = vpop.eup %1328 }
 0x22e   :  { %387 = vperm.xlu1 %1318, %v1325_v63   ;;  %v1331_v4 = vpop.eup %1330 }
 0x22f   :  { %v1562_v12 = vpop.eup %1332 }
 0x230   :  { %v1565_v13 = vpop.eup %1334 }
 0x232   :  { %390 = vperm.xlu1 %1318, %v1327_v1  }
 0x236   :  { %393 = vperm.xlu1 %1318, %v1329_v3  }
 0x23a   :  { %396 = vperm.xlu1 %1318, %v1331_v4  }
 0x23e   :  { %399 = vperm.xlu1 %1318, %v1562_v12  }
 0x242   :  { %402 = vperm.xlu1 %1318, %v1565_v13  }
 0x2a5   :  { %v382_v14 = vpop.permute.xlu1 %381 }
 0x2a6   :  { %v385_v18 = vpop.permute.xlu0 %384  ;;  %v407_v21 = vrot.slane %v382_v14, %v1520_v58 }
 0x2a7   :  { %v411_v20 = vrot.slane %v385_v18, %v1520_v58 }
 0x2a9   :  { %v388_v15 = vpop.permute.xlu1 %387  ;;  %v436_v26 = vsel %vm288_vm2, %v411_v20, %v407_v21 }
 0x2aa   :  { %v415_v22 = vrot.slane %v388_v15, %v1520_v58 }
 0x2ac   :  { %v437_v32 = vsel %vm290_vm3, %v415_v22, %v436_v26 }
 0x2ad   :  { %v391_v16 = vpop.permute.xlu1 %390 }
 0x2ae   :  { %v419_v23 = vrot.slane %v391_v16, %v1520_v58 }
 0x2b0   :  { %v438_v34 = vsel %vm292_vm4, %v419_v23, %v437_v32 }
 0x2b1   :  { %v394_v17 = vpop.permute.xlu1 %393 }
 0x2b2   :  { %v423_v24 = vrot.slane %v394_v17, %v1520_v58 }
 0x2b4   :  { %v439_v36 = vsel %vm294_vm5, %v423_v24, %v438_v34 }
 0x2b5   :  { %v397_v19 = vpop.permute.xlu1 %396 }
 0x2b6   :  { %v427_v31 = vrot.slane %v397_v19, %v1520_v58 }
 0x2b8   :  { %v440_v38 = vsel %vm296_vm6, %v427_v31, %v439_v36 }
 0x2b9   :  { %v400_v25 = vpop.permute.xlu1 %399 }
 0x2ba   :  { %v431_v33 = vrot.slane %v400_v25, %v1520_v58 }
 0x2bc   :  { %v441_v40 = vsel %vm298_vm7, %v431_v33, %v440_v38 }
 0x2bd   :  { %v403_v37 = vpop.permute.xlu1 %402 }
 0x2be   :  { %v435_v39 = vrot.slane %v403_v37, %v1520_v58 }
 0x2c0   :  { %v442_v41 = vsel %vm300_vm8, %v435_v39, %v441_v40 }
 0x2c1   :  { %v444_v43 = vsel %vm303_vm9, %v442_v41, 0.0 }
 0x2c2   :  { %445 = vadd.xlane.f32.xlu1 %v444_v43 }
 0x34b   :  { %v446_v44 = vpop.xlane.xlu1 %445 }
 0x34c   :  { %1336 = vrcp.f32 %v446_v44 }
 0x359   :  { %v1337_v45 = vpop.eup %1336 }
 0x35a   :  { %v448_v47 = vmul.f32 %v1337_v45, %v446_v44 }
 0x35c   :  { %v449_v48 = vsub.f32 2.0, %v448_v47 }
 0x35e   :  { %v450_v49 = vmul.f32 %v1337_v45, %v449_v48 }
 0x360   :  { %v455_v51 = vrot.slane %v450_v49, %v310_v27  ;;  %v459_v53 = vrot.slane %v450_v49, %v314_v28  ;;  %v463_v57 = vrot.slane %v450_v49, %v318_v29  ;;  %v467_v28 = vrot.slane %v450_v49, %v322_v30 }
 0x361   :  { %v471_v29 = vrot.slane %v450_v49, %v326_v35  ;;  %v479_v61 = vrot.slane %v450_v49, %v334_v46  ;;  %v483_v30 = vrot.slane %v450_v49, %v338_v50 }
 0x362   :  { %v492_v52 = vmul.f32 %v1321_v59, %v455_v51  ;;  %v493_v55 = vmul.f32 %v1323_v60, %v459_v53  ;;  %v494_v27 = vmul.f32 %v1325_v63, %v463_v57  ;;  %v495_v59 = vmul.f32 %v1327_v1, %v467_v28 }
 0x363   :  { %v496_v2 = vmul.f32 %v1329_v3, %v471_v29  ;;  %v475_v60 = vrot.slane %v450_v49, %v330_v42  ;;  %v498_v62 = vmul.f32 %v1562_v12, %v479_v61  ;;  %v499_v63 = vmul.f32 %v1565_v13, %v483_v30 }
 0x364   :  { %509 = vperm.xlu0 %1319, %v492_v52  }
 0x365   :  { %v497_v10 = vmul.f32 %v1331_v4, %v475_v60 }
 0x368   :  { %512 = vperm.xlu0 %1319, %v493_v55  }
 0x36c   :  { %515 = vperm.xlu0 %1319, %v494_v27  }
 0x370   :  { %518 = vperm.xlu0 %1319, %v495_v59  }
 0x374   :  { %521 = vperm.xlu0 %1319, %v496_v2  }
 0x378   :  { %524 = vperm.xlu0 %1319, %v497_v10  }
 0x37c   :  { %527 = vperm.xlu0 %1319, %v498_v62  }
 0x380   :  { %530 = vperm.xlu0 %1319, %v499_v63  }
 0x3df   :  { %v510_v35 = vpop.permute.xlu0 %509 }
 0x3e0   :  { %v535_v0 = vrot.slane %v510_v35, %v1520_v58 }
 0x3e2   :  { %1272 = vmatmul.mubr.msk.f32.vlgmr.msra.gmra.mxu1 %vm303_vm9, %v535_v0 }
 0x3e3   :  { %v513_v42 = vpop.permute.xlu0 %512  ;;  %1275 = vmatpush3.msra.mxu1 %v1475_v5  ;;  %1276 = vmatprep.mubr.msk.f32.mxu1 %vm1432_vm10, %v1431_v54 }
 0x3e4   :  { %v539_v46 = vrot.slane %v513_v42, %v1520_v58  ;;  %1279 = vmatprep.subr.mxu1 %v1431_v54 }
 0x3e6   :  { %1277 = vmatmul.mubr.msk.f32.vlgmr.msra.gmra.mxu1 %vm303_vm9, %v539_v46  ;;  %v564_v12 = vsel %vm288_vm2, %v539_v46, %v535_v0 }
 0x3e7   :  { %v516_v56 = vpop.permute.xlu0 %515  ;;  %1280 = vmatpush3.msra.mxu1 %v1477_v6  ;;  %1281 = vmatprep.mubr.msk.f32.mxu1 %vm1432_vm10, %v1431_v54 }
 0x3e8   :  { %v543_v50 = vrot.slane %v516_v56, %v1520_v58  ;;  %1284 = vmatprep.subr.mxu1 %v1431_v54 }
 0x3ea   :  { %1282 = vmatmul.mubr.msk.f32.vlgmr.msra.gmra.mxu1 %vm303_vm9, %v543_v50 }
 0x3eb   :  { %v519_v5 = vpop.permute.xlu0 %518  ;;  %1285 = vmatpush3.msra.mxu1 %v1483_v7  ;;  %1286 = vmatprep.mubr.msk.f32.mxu1 %vm1432_vm10, %v1431_v54 }
 0x3ec   :  { %v547_v1 = vrot.slane %v519_v5, %v1520_v58  ;;  %1289 = vmatprep.subr.mxu1 %v1431_v54 }
 0x3ee   :  { %1287 = vmatmul.mubr.msk.f32.vlgmr.msra.gmra.mxu1 %vm303_vm9, %v547_v1 }
 0x3ef   :  { %v522_v6 = vpop.permute.xlu0 %521  ;;  %1290 = vmatpush3.msra.mxu1 %v1485_v8  ;;  %1291 = vmatprep.mubr.msk.f32.mxu1 %vm1432_vm10, %v1431_v54 }
 0x3f0   :  { %v551_v3 = vrot.slane %v522_v6, %v1520_v58  ;;  %1294 = vmatprep.subr.mxu1 %v1431_v54 }
 0x3f2   :  { %1292 = vmatmul.mubr.msk.f32.vlgmr.msra.gmra.mxu1 %vm303_vm9, %v551_v3 }
 0x3f3   :  { %v525_v7 = vpop.permute.xlu0 %524  ;;  %1295 = vmatpush3.msra.mxu1 %v1491_v9  ;;  %1296 = vmatprep.mubr.msk.f32.mxu1 %vm1432_vm10, %v1431_v54  ;;  %v565_v9 = vsel %vm290_vm3, %v543_v50, %v564_v12 }
 0x3f4   :  { %v555_v4 = vrot.slane %v525_v7, %v1520_v58  ;;  %1304 = vmatprep.subr.mxu1 %v1431_v54  ;;  %v566_v14 = vsel %vm292_vm4, %v547_v1, %v565_v9 }
 0x3f5   :  { %v567_v15 = vsel %vm294_vm5, %v551_v3, %v566_v14 }
 0x3f6   :  { %1297 = vmatmul.mubr.msk.f32.vlgmr.msra.gmra.mxu1 %vm303_vm9, %v555_v4  ;;  %v568_v17 = vsel %vm296_vm6, %v555_v4, %v567_v15 }
 0x3f7   :  { %v528_v8 = vpop.permute.xlu0 %527  ;;  %1305 = vmatpush3.msra.mxu1 %v1499_v11  ;;  %1306 = vmatprep.mubr.msk.f32.mxu1 %vm1432_vm10, %v1431_v54 }
 0x3f8   :  { %v559_v13 = vrot.slane %v528_v8, %v1520_v58 }
 0x3fa   :  { %1302 = vmatmul.mubr.msk.f32.vlgmr.msra.gmra.mxu0 %vm303_vm9, %v559_v13  ;;  %v569_v18 = vsel %vm298_vm7, %v559_v13, %v568_v17 }
 0x3fb   :  { %v531_v16 = vpop.permute.xlu0 %530 }
 0x3fc   :  { %v563_v11 = vrot.slane %v531_v16, %v1520_v58 }
 0x3fe   :  { %1307 = vmatmul.mubr.msk.f32.vlgmr.msra.gmra.mxu1 %vm303_vm9, %v563_v11  ;;  %v570_v19 = vsel %vm300_vm8, %v563_v11, %v569_v18 }
 0x3ff   :  { %572 = vst.msk [vmem:[#allocation8] sm:$0xff] %vm303_vm9, %v570_v19 }
 0x400   :  { %1389 = shalt.err (!%p1386_p0)
}
 0x401   :  { %1192 = dma.vmem_to_hbm [thread:$0]  %s1190_s3, 128, %s1677_s5, [#allocation9]  }
 0x402   :  { %s1434_s5 = smov [#allocation7]  }
 0x403   :  { %s1179_s10 = sshll.u32 %s1434_s5, 4  ;;  %s1180_s10 = int_to_ptr.vmem [resolvable:$true] %s1179_s10 }
 0x404   :  { %s1398_s11 = scalar_lea.vmem %s1180_s10, 128  ;;  %p1403_p2 = scmp.lt.s32.totalorder %s1180_s10, %s1180_s10 }
 0x405   :  { %p1399_p1 = scmp.ne.s32.totalorder %s1180_s10, %s1398_s11  ;;  %p1404_p3 = scmp.lt.s32.totalorder %s1398_s11, %s1398_s11 }
 0x407   :  { %p1405_p4 = por %p1404_p3, %p1403_p2 }
 0x409   :  { %p1406_p5 = pnand %p1405_p4, %p1399_p1 }
 0x4a2   :  { %v641_v58 = vpop.f32.mrf.mxu1 }
 0x4a4   :  { %v1273_v20 = vpop.f32.mrf.mxu1 }
 0x4a6   :  { %v713_v21 = vpop.f32.mrf.mxu1 }
 0x4a7   :  { %v1157_v34 = vrot.slane %v713_v21, 7 }
 0x4a8   :  { %v1278_v22 = vpop.f32.mrf.mxu1 }
 0x4a9   :  { %v1158_v41 = vsel %vm288_vm2, %v1157_v34, %v641_v58 }
 0x4aa   :  { %v785_v23 = vpop.f32.mrf.mxu1 }
 0x4ab   :  { %v1159_v36 = vrot.slane %v785_v23, 6 }
 0x4ac   :  { %v1283_v24 = vpop.f32.mrf.mxu1 }
 0x4ad   :  { %v1160_v44 = vsel %vm290_vm3, %v1159_v36, %v1158_v41 }
 0x4ae   :  { %v857_v25 = vpop.f32.mrf.mxu1 }
 0x4af   :  { %v1161_v38 = vrot.slane %v857_v25, 5 }
 0x4b0   :  { %v1288_v26 = vpop.f32.mrf.mxu1 }
 0x4b1   :  { %v1162_v48 = vsel %vm292_vm4, %v1161_v38, %v1160_v44 }
 0x4b2   :  { %v929_v31 = vpop.f32.mrf.mxu1 }
 0x4b3   :  { %v1163_v39 = vrot.slane %v929_v31, 4 }
 0x4b4   :  { %v1293_v32 = vpop.f32.mrf.mxu1 }
 0x4b5   :  { %v1164_v49 = vsel %vm294_vm5, %v1163_v39, %v1162_v48 }
 0x4b6   :  { %v1001_v33 = vpop.f32.mrf.mxu1 }
 0x4b7   :  { %v1165_v43 = vrot.slane %v1001_v33, 3 }
 0x4b8   :  { %v1298_v37 = vpop.f32.mrf.mxu1 }
 0x4b9   :  { %v1166_v52 = vsel %vm296_vm6, %v1165_v43, %v1164_v49 }
 0x4ba   :  { %v1073_v40 = vpop.f32.mrf.mxu0 }
 0x4bb   :  { %v1167_v45 = vrot.slane %v1073_v40, 2 }
 0x4bc   :  { %v1303_v47 = vpop.f32.mrf.mxu0 }
 0x4bd   :  { %v1168_v54 = vsel %vm298_vm7, %v1167_v45, %v1166_v52 }
 0x4be   :  { %v1145_v51 = vpop.f32.mrf.mxu1 }
 0x4bf   :  { %v1169_v53 = vrot.slane %v1145_v51, 1 }
 0x4c0   :  { %v1308_v55 = vpop.f32.mrf.mxu1 }
 0x4c1   :  { %v1170_v57 = vsel %vm300_vm8, %v1169_v53, %v1168_v54 }
 0x4c2   :  { %1172 = vst.msk [vmem:[#allocation7] sm:$0xff] %vm68_vm0, %v1170_v57 }
 0x4c3   :  { %1409 = shalt.err (!%p1406_p5)
}
 0x4c4   :  { %1182 = dma.vmem_to_hbm [thread:$0]  %s1180_s10, 128, %s1676_s4, [#allocation4]  }
 0x4c5   :  { %1422 = dma.done.wait [#allocation4], 128  }
 0x4c6   :  { %1423 = vsyncadd [#allocation4], 4294967168 }
 0x4c7   :  { %1424 = dma.done.wait [#allocation9], 128  }
 0x4c8   :  { %1425 = vsyncadd [#allocation9], 4294967168 }
 0x4c9   :  { %1199 = vsyncpa [#allocation3], 1 }
 0x4ca   :  { %1200 = vsyncpa [#allocation6], 1 }
 0x4cb   :  { %1201 = vsyncpa [#allocation4], 1 }
 0x4cc   :  { %1202 = vsyncpa [#allocation9], 1 }

</bundles_post_ra>
